<compile_context>
chip_gen: v7x
topology: tpu7x:2x2x1
jax: 0.10.0
libtpu: 0.0.40
codegen_flags: <defaults>
</compile_context>

<pallas_src>
import jax
import jax.numpy as jnp
from jax.experimental import pallas as pl
from jax.experimental.pallas import tpu as pltpu


def _patch_embed_kernel(x_ref, w_ref, b_ref, o_ref):
    # x_ref: (TM, K)    w_ref: (K, Np)    b_ref: (1, Np) f32    o_ref: (TM, Np)
    x = x_ref[...]
    if x.dtype != w_ref.dtype:
        x = x.astype(w_ref.dtype)          # per-tile cast: no extra HBM pass
    acc = jnp.dot(x, w_ref[...], preferred_element_type=jnp.float32)
    o_ref[...] = (acc + b_ref[...]).astype(o_ref.dtype)


def _round_up(x, m):
    return ((x + m - 1) // m) * m


def patch_embedding(x, weight, bias, *, compute_dtype=None, out_dtype=None,
                    tile_m=2048):
    """PatchEmbedding forward (eval mode: Dropout is identity).

    x:      (B, N, Din) with Din = patch_size * patch_size
    weight: (Dout, Din)  -- PyTorch nn.Linear layout
    bias:   (Dout,)
    compute_dtype: optional matmul operand dtype (e.g. jnp.bfloat16); None keeps
                   the PyTorch f32 numerics.  Accumulation is always f32.
    out_dtype: output dtype (defaults to x.dtype).
    returns (B, N, Dout)
    """
    B, N, Din = x.shape
    Dout = weight.shape[0]
    out_dtype = jnp.dtype(x.dtype if out_dtype is None else out_dtype)
    M = B * N

    # Pack several patches into each 128-lane row when shapes allow:
    # (M, Din) -> (M // pack, pack * Din) is a contiguous (free) reshape.
    if Din <= 128 and 128 % Din == 0 and M % (128 // Din) == 0:
        pack = 128 // Din
    else:
        pack = 1                              # plain (M, Din) fallback layout

    rows = M // pack                          # row count seen by the grid
    K = pack * Din                            # contraction width (128 if packed)
    Np = pack * Dout                          # lane-dense output width, no pad

    x2d = x.reshape(rows, K)

    w_t = weight.T                            # (Din, Dout)
    if compute_dtype is not None:
        w_t = w_t.astype(compute_dtype)
    if pack > 1:
        # Block-diagonal expansion: row-block p of K feeds column-block p of Np.
        w_t = jnp.kron(jnp.eye(pack, dtype=w_t.dtype), w_t)      # (K, Np)
    b2d = jnp.tile(bias.astype(jnp.float32), pack).reshape(1, Np)

    # Row-tile: sublane aligned, capped at ceil(rows/2) so the grid has >= 2
    # steps (lets the "parallel" axis shard across v7x's two TensorCores).
    sub = {1: 32, 2: 16}.get(jnp.dtype(x.dtype).itemsize, 8)
    if rows <= sub:
        tm = rows                              # full-dim block (always legal)
    else:
        tm = min(_round_up(int(tile_m), sub), _round_up(pl.cdiv(rows, 2), sub))
    grid = (pl.cdiv(rows, tm),)

    bytes_accessed = (rows * K * x.dtype.itemsize
                      + K * Np * w_t.dtype.itemsize
                      + Np * 4
                      + rows * Np * out_dtype.itemsize)

    out2d = pl.pallas_call(
        _patch_embed_kernel,
        out_shape=jax.ShapeDtypeStruct((rows, Np), out_dtype),
        grid_spec=pl.GridSpec(
            grid=grid,
            in_specs=[
                pl.BlockSpec((tm, K), lambda i: (i, 0)),    # x tile, pipelined
                pl.BlockSpec((K, Np), lambda i: (0, 0)),    # weight, VMEM-resident
                pl.BlockSpec((1, Np), lambda i: (0, 0)),    # bias, VMEM-resident
            ],
            out_specs=pl.BlockSpec((tm, Np), lambda i: (i, 0)),
        ),
        compiler_params=pltpu.CompilerParams(
            dimension_semantics=("parallel",),              # 2-TC sharding on v7x
        ),
        cost_estimate=pl.CostEstimate(
            flops=2 * rows * K * Np, transcendentals=0,
            bytes_accessed=int(bytes_accessed)),
    )(x2d, w_t, b2d)

    # (rows, pack*Dout) -> (B, N, Dout): contiguous reshape, no copy / slice.
    return out2d.reshape(B, N, Dout)


if __name__ == "__main__":
    # Module-consistent small shapes: patch_size=4 -> Din=16, vit_dim=32,
    # batch=2, num_patches=8.
    patch_size = 4
    vit_dim = 32
    B, N = 2, 8
    Din = patch_size * patch_size

    key = jax.random.PRNGKey(0)
    kx, kw, kb = jax.random.split(key, 3)

    x = jax.random.normal(kx, (B, N, Din), dtype=jnp.float32)
    bound = 1.0 / (Din ** 0.5)
    weight = jax.random.uniform(kw, (vit_dim, Din), minval=-bound, maxval=bound,
                                dtype=jnp.float32)   # PyTorch (out, in) layout
    bias = jax.random.uniform(kb, (vit_dim,), minval=-bound, maxval=bound,
                              dtype=jnp.float32)

    out = patch_embedding(x, weight, bias)
    out = jax.block_until_ready(out)
    assert out.shape == (B, N, vit_dim)

    # Reference: f32 Linear; Dropout(0.1) in eval mode is identity.
    ref = x @ weight.T + bias
    assert jnp.allclose(out, ref, atol=1e-2, rtol=1e-2), \
        float(jnp.max(jnp.abs(out - ref)))

    # Second case: exercises the tiled / pipelined path (grid > 1) and the
    # bf16-output option (halves the dominant output-write bytes).
    B2, N2 = 4, 64
    x2 = jax.random.normal(kx, (B2, N2, Din), dtype=jnp.float32)
    out2 = jax.block_until_ready(
        patch_embedding(x2, weight, bias, tile_m=16, out_dtype=jnp.bfloat16))
    ref2 = x2 @ weight.T + bias
    assert out2.shape == (B2, N2, vit_dim)
    assert jnp.allclose(out2.astype(jnp.float32), ref2, atol=3e-2, rtol=3e-2), \
        float(jnp.max(jnp.abs(out2.astype(jnp.float32) - ref2)))

    print("KERNEL_OK")
</pallas_src>

<mosaic_0001>
module attributes {stable_mosaic.version = 11 : i64} {
  func.func @_patch_embed_kernel(%arg0: i32, %arg1: memref<2x128xf32, #tpu.memory_space<vmem>>, %arg2: memref<128x256xf32, #tpu.memory_space<vmem>>, %arg3: memref<1x256xf32, #tpu.memory_space<vmem>>, %arg4: memref<2x256xf32, #tpu.memory_space<vmem>>) attributes {dimension_semantics = [#tpu.dimension_semantics<parallel>], iteration_bounds = array<i64: 1>, scalar_prefetch = 0 : i64, scratch_operands = 0 : i64, tpu.core_type = #tpu.core_type<tc>, window_params = [{transform_indices = @transform_0, window_bounds = array<i64: 2, 128>}, {pipeline_mode = #tpu.pipeline_mode<synchronous>, transform_indices = @transform_1, window_bounds = array<i64: 128, 256>}, {pipeline_mode = #tpu.pipeline_mode<synchronous>, transform_indices = @transform_2, window_bounds = array<i64: 1, 256>}, {transform_indices = @transform_3, window_bounds = array<i64: 2, 256>}]} {
    %c0 = arith.constant 0 : index
    %c0_0 = arith.constant 0 : index
    %0 = vector.load %arg1[%c0, %c0_0] : memref<2x128xf32, #tpu.memory_space<vmem>>, vector<2x128xf32>
    %c0_1 = arith.constant 0 : index
    %c0_2 = arith.constant 0 : index
    %1 = vector.load %arg2[%c0_1, %c0_2] : memref<128x256xf32, #tpu.memory_space<vmem>>, vector<128x256xf32>
    %cst = arith.constant dense<0.000000e+00> : vector<2x256xf32>
    %2 = tpu.matmul %0, %1, %cst {dimension_numbers = #tpu.dot_dimension_numbers<[1], [0], [0], [1], [0, 0, 1, 1], [], []>} : vector<2x128xf32>, vector<128x256xf32>, vector<2x256xf32> -> vector<2x256xf32>
    %c0_3 = arith.constant 0 : index
    %c0_4 = arith.constant 0 : index
    %3 = vector.load %arg3[%c0_3, %c0_4] : memref<1x256xf32, #tpu.memory_space<vmem>>, vector<1x256xf32>
    %4 = vector.broadcast %3 : vector<1x256xf32> to vector<2x256xf32>
    %5 = arith.addf %2, %4 : vector<2x256xf32>
    %c0_5 = arith.constant 0 : index
    %c0_6 = arith.constant 0 : index
    %6 = vector.load %arg4[%c0_5, %c0_6] : memref<2x256xf32, #tpu.memory_space<vmem>>, vector<2x256xf32>
    tpu.vector_store %arg4[%c0_5, %c0_6], %5 {strides = array<i32>} : memref<2x256xf32, #tpu.memory_space<vmem>>, vector<2x256xf32>,
    return
  }
  func.func @transform_0(%arg0: i32) -> (i32, i32) {
    %c0_i32 = arith.constant 0 : i32
    %c0_i32_0 = arith.constant 0 : i32
    return %arg0, %c0_i32 : i32, i32
  }
  func.func @transform_1(%arg0: i32) -> (i32, i32) {
    %c0_i32 = arith.constant 0 : i32
    %c0_i32_0 = arith.constant 0 : i32
    %c0_i32_1 = arith.constant 0 : i32
    return %c0_i32, %c0_i32_0 : i32, i32
  }
  func.func @transform_2(%arg0: i32) -> (i32, i32) {
    %c0_i32 = arith.constant 0 : i32
    %c0_i32_0 = arith.constant 0 : i32
    %c0_i32_1 = arith.constant 0 : i32
    return %c0_i32, %c0_i32_0 : i32, i32
  }
  func.func @transform_3(%arg0: i32) -> (i32, i32) {
    %c0_i32 = arith.constant 0 : i32
    %c0_i32_0 = arith.constant 0 : i32
    return %arg0, %c0_i32 : i32, i32
  }
}

</mosaic_0001>

<bundles_post_ra>
// kernel: tpu_custom_call.1
= control target key start
LH: loop header
LB: loop body
LE: loop exit
PB: predicated region body
PF: predicated region fallthrough
CT: control target
= control target key end

     0   :  { %8 = vsyncpa [#allocation3], 0  ;;  %s368_s0 = inlined_call_operand.hbm [shape: f32[2,128], index: 0, kind: input, shape index: {}]   ;;  %s369_s1 = inlined_call_operand.hbm [shape: f32[128,256], index: 1, kind: input, shape index: {}]   ;;  %s370_s2 = inlined_call_operand.vmem [shape: f32[1,256], index: 2, kind: input, shape index: {}]   ;;  %s371_s3 = inlined_call_operand.hbm [shape: f32[2,256], index: 3, kind: output, shape index: {}]  }
   0x1   :  { %9 = vsyncpa [#allocation6], 0 }
   0x2   :  { %10 = vsyncpa [#allocation4], 0  ;;  %s296_s12 = smov [#allocation2]   ;;  %s297_s14 = smov [#allocation5]  }
   0x3   :  { %s17_s13 = sshll.u32 %s296_s12, 4  ;;  %s26_s15 = sshll.u32 %s297_s14, 4  ;;  %s18_s13 = int_to_ptr.vmem [resolvable:$true] %s17_s13  ;;  %s322_s15 = int_to_ptr.vmem [resolvable:$true] %s26_s15 }
   0x4   :  { %s224_s18 = scalar_lea.hbm %s368_s0, 32 }
   0x5   :  { %p225_p0 = scmp.ne.s32.totalorder %s368_s0, %s224_s18  ;;  %p228_p1 = scmp.lt.u32.totalorder %s224_s18, %s368_s0 }
   0x7   :  { %p230_p2 = pnand %p228_p1, %p225_p0 }
   0x9   :  { %233 = shalt.err (!%p230_p2)
}
   0xa   :  { %s234_s23 = scalar_lea.vmem %s18_s13, 32  ;;  %p239_p4 = scmp.lt.s32.totalorder %s18_s13, %s18_s13 }
   0xb   :  { %p235_p3 = scmp.ne.s32.totalorder %s18_s13, %s234_s23  ;;  %p240_p5 = scmp.lt.s32.totalorder %s234_s23, %s234_s23 }
   0xd   :  { %p241_p6 = por %p240_p5, %p239_p4 }
   0xf   :  { %p242_p7 = pnand %p241_p6, %p235_p3 }
  0x11   :  { %245 = shalt.err (!%p242_p7)
}
  0x12   :  { %20 = dma.hbm_to_vmem [thread:$0]  %s368_s0, 32, %s18_s13, [#allocation3]  }
  0x13   :  { %s246_s28 = scalar_lea.hbm %s369_s1, 4096 }
  0x14   :  { %p247_p8 = scmp.ne.s32.totalorder %s369_s1, %s246_s28  ;;  %p250_p9 = scmp.lt.u32.totalorder %s246_s28, %s369_s1 }
  0x16   :  { %p252_p10 = pnand %p250_p9, %p247_p8 }
  0x18   :  { %255 = shalt.err (!%p252_p10)
}
  0x19   :  { %s256_s6 = scalar_lea.vmem %s322_s15, 4096  ;;  %p261_p12 = scmp.lt.s32.totalorder %s322_s15, %s322_s15 }
  0x1a   :  { %p257_p11 = scmp.ne.s32.totalorder %s322_s15, %s256_s6  ;;  %p262_p13 = scmp.lt.s32.totalorder %s256_s6, %s256_s6 }
  0x1c   :  { %p263_p0 = por %p262_p13, %p261_p12 }
  0x1e   :  { %p264_p1 = pnand %p263_p0, %p257_p11 }
  0x20   :  { %267 = shalt.err (!%p264_p1)
}
  0x21   :  { %s298_s0 = smov 256   ;;  %s299_s7 = smov 16  }
  0x22   :  { %32 = dma.hbm_to_vmem [thread:$0]  %s369_s1, 4096, %s322_s15, [#allocation6], %s298_s0, %s298_s0, %s299_s7  }
  0x23   :  { %290 = dma.done.wait [#allocation3], 32  }
  0x24   :  { %291 = vsyncadd [#allocation3], 4294967264 }
  0x25   :  { %292 = dma.done.wait [#allocation6], 4096  }
  0x26   :  { %293 = vsyncadd [#allocation6], 4294963200  ;;  %v300_v0 = vmov 0.0   ;;  %v43_v1 = vld [vmem:[#allocation5 + $0x8] sm:$0xff]  ;;  %v45_v2 = vld [vmem:[#allocation5 + $0x18] sm:$0xff]  ;;  %v76_v50 = vlaneseq  ;;  %s301_s11 = smov [#allocation7]  }
  0x27   :  { %150 = vmatprep.mubr.f32.mxu0 %v300_v0  ;;  %v42_v3 = vld [vmem:[#allocation5] sm:$0xff]  ;;  %v186_v4 = vpack.c.bf16 %v45_v2, %v43_v1  ;;  %v44_v5 = vld [vmem:[#allocation5 + $0x10] sm:$0xff]  ;;  %v47_v6 = vld [vmem:[#allocation5 + $0x28] sm:$0xff]  ;;  %s175_s12 = sshll.u32 %s301_s11, 4  ;;  %s176_s12 = int_to_ptr.vmem [resolvable:$true] %s175_s12 }
  0x28   :  { %v49_v7 = vld [vmem:[#allocation5 + $0x38] sm:$0xff]  ;;  %v188_v8 = vpack.c.bf16 %v44_v5, %v42_v3  ;;  %v46_v10 = vld [vmem:[#allocation5 + $0x20] sm:$0xff]  ;;  %v48_v11 = vld [vmem:[#allocation5 + $0x30] sm:$0xff]  ;;  %v77_v51 = vshrl.u32 %v76_v50, 7  ;;  %s268_s13 = scalar_lea.vmem %s176_s12, 64  ;;  %p273_p3 = scmp.lt.s32.totalorder %s176_s12, %s176_s12 }
  0x29   :  { %v190_v9 = vpack.c.bf16 %v49_v7, %v47_v6  ;;  %v51_v12 = vld [vmem:[#allocation5 + $0x48] sm:$0xff]  ;;  %187 = vmatprep.subr.bf16.mxu0 %v186_v4  ;;  %v53_v13 = vld [vmem:[#allocation5 + $0x58] sm:$0xff]  ;;  %v192_v14 = vpack.c.bf16 %v48_v11, %v46_v10  ;;  %v50_v16 = vld [vmem:[#allocation5 + $0x40] sm:$0xff]  ;;  %p269_p2 = scmp.ne.s32.totalorder %s176_s12, %s268_s13  ;;  %p274_p4 = scmp.lt.s32.totalorder %s268_s13, %s268_s13 }
  0x2a   :  { %189 = vmatpush1.bf16.msra.mxu0 %v188_v8  ;;  %v194_v15 = vpack.c.bf16 %v53_v13, %v51_v12  ;;  %v52_v17 = vld [vmem:[#allocation5 + $0x50] sm:$0xff]  ;;  %v55_v18 = vld [vmem:[#allocation5 + $0x68] sm:$0xff]  ;;  %v57_v19 = vld [vmem:[#allocation5 + $0x78] sm:$0xff]  ;;  %v78_v52 = vsub.s32 0, %v77_v51  ;;  %v82_v54 = vsub.s32 1, %v77_v51 }
  0x2b   :  { %191 = vmatprep.subr.bf16.mxu0 %v190_v9  ;;  %v196_v20 = vpack.c.bf16 %v52_v17, %v50_v16  ;;  %v198_v21 = vpack.c.bf16 %v57_v19, %v55_v18  ;;  %v54_v22 = vld [vmem:[#allocation5 + $0x60] sm:$0xff]  ;;  %v56_v23 = vld [vmem:[#allocation5 + $0x70] sm:$0xff]  ;;  %v59_v24 = vld [vmem:[#allocation5 + $0x88] sm:$0xff]  ;;  %p275_p5 = por %p274_p4, %p273_p3 }
  0x2c   :  { %v61_v25 = vld [vmem:[#allocation5 + $0x98] sm:$0xff]  ;;  %v200_v26 = vpack.c.bf16 %v56_v23, %v54_v22  ;;  %v58_v28 = vld [vmem:[#allocation5 + $0x80] sm:$0xff]  ;;  %v60_v29 = vld [vmem:[#allocation5 + $0x90] sm:$0xff] }
  0x2d   :  { %v202_v27 = vpack.c.bf16 %v61_v25, %v59_v24  ;;  %v63_v30 = vld [vmem:[#allocation5 + $0xa8] sm:$0xff]  ;;  %v65_v31 = vld [vmem:[#allocation5 + $0xb8] sm:$0xff]  ;;  %v204_v32 = vpack.c.bf16 %v60_v29, %v58_v28  ;;  %v62_v34 = vld [vmem:[#allocation5 + $0xa0] sm:$0xff]  ;;  %p276_p6 = pnand %p275_p5, %p269_p2 }
  0x2e   :  { %193 = vmatpush1.bf16.msra.mxu0 %v192_v14  ;;  %v206_v33 = vpack.c.bf16 %v65_v31, %v63_v30  ;;  %v64_v35 = vld [vmem:[#allocation5 + $0xb0] sm:$0xff]  ;;  %v67_v36 = vld [vmem:[#allocation5 + $0xc8] sm:$0xff]  ;;  %v69_v37 = vld [vmem:[#allocation5 + $0xd8] sm:$0xff] }
  0x2f   :  { %195 = vmatprep.subr.bf16.mxu0 %v194_v15  ;;  %v208_v38 = vpack.c.bf16 %v64_v35, %v62_v34  ;;  %v210_v39 = vpack.c.bf16 %v69_v37, %v67_v36  ;;  %v66_v40 = vld [vmem:[#allocation5 + $0xc0] sm:$0xff]  ;;  %v68_v41 = vld [vmem:[#allocation5 + $0xd0] sm:$0xff]  ;;  %v71_v42 = vld [vmem:[#allocation5 + $0xe8] sm:$0xff] }
  0x30   :  { %v73_v43 = vld [vmem:[#allocation5 + $0xf8] sm:$0xff]  ;;  %v212_v44 = vpack.c.bf16 %v68_v41, %v66_v40  ;;  %v70_v46 = vld [vmem:[#allocation5 + $0xe0] sm:$0xff]  ;;  %v72_v47 = vld [vmem:[#allocation5 + $0xf0] sm:$0xff] }
  0x31   :  { %v214_v45 = vpack.c.bf16 %v73_v43, %v71_v42  ;;  %v216_v48 = vpack.c.bf16 %v72_v47, %v70_v46  ;;  %v41_v49 = vld [vmem:[#allocation2] sm:$0x3] }
  0x32   :  { %197 = vmatpush1.bf16.msra.mxu0 %v196_v20  ;;  %v74_v53 = vld [vmem:[%s370_s2] sm:$0x3] }
  0x33   :  { %199 = vmatprep.subr.bf16.mxu0 %v198_v21  ;;  %v79_v55 = vrot.slane %v74_v53, %v78_v52  ;;  %v83_v56 = vrot.slane %v74_v53, %v82_v54 }
  0x36   :  { %201 = vmatpush1.bf16.msra.mxu0 %v200_v26 }
  0x37   :  { %203 = vmatprep.subr.bf16.mxu0 %v202_v27 }
  0x3a   :  { %205 = vmatpush1.bf16.msra.mxu0 %v204_v32 }
  0x3b   :  { %207 = vmatprep.subr.bf16.mxu0 %v206_v33 }
  0x3e   :  { %209 = vmatpush1.bf16.msra.mxu0 %v208_v38 }
  0x3f   :  { %211 = vmatprep.subr.bf16.mxu0 %v210_v39 }
  0x42   :  { %213 = vmatpush1.bf16.msra.mxu0 %v212_v44 }
  0x43   :  { %215 = vmatprep.subr.bf16.mxu0 %v214_v45 }
  0x46   :  { %217 = vmatpush1.bf16.msra.mxu0 %v216_v48 }
  0x49   :  { %151 = vmatmul.mubr.f32.vlgmr.msra.gmra.mrb[0].mxu0 %v41_v49 }
 0x11c   :  { %v152_v57 = vpop.f32.mrb[0].mxu0 }
 0x11d   :  { %v153_v58 = vadd.f32 %v152_v57, %v79_v55  ;;  %v154_v59 = vpop.f32.mrb[1].mxu0 }
 0x11e   :  { %v155_v60 = vadd.f32 %v154_v59, %v83_v56 }
 0x120   :  { %v159_v61 = vcombine.low %v153_v58, %v155_v60 }
 0x122   :  { %185 = vst.sshfl [vmem:[#allocation7] sm:$0x33 pattern:$0x76325410] %v159_v61 }
 0x123   :  { %279 = shalt.err (!%p276_p6)
}
 0x124   :  { %s280_s15 = scalar_lea.hbm %s371_s3, 64 }
 0x125   :  { %p281_p7 = scmp.ne.s32.totalorder %s371_s3, %s280_s15  ;;  %p284_p8 = scmp.lt.u32.totalorder %s280_s15, %s371_s3 }
 0x127   :  { %p286_p9 = pnand %p284_p8, %p281_p7 }
 0x129   :  { %289 = shalt.err (!%p286_p9)
}
 0x12a   :  { %178 = dma.vmem_to_hbm [thread:$0]  %s176_s12, 64, %s371_s3, [#allocation4]  }
 0x12b   :  { %294 = dma.done.wait [#allocation4], 64  }
 0x12c   :  { %295 = vsyncadd [#allocation4], 4294967232 }
 0x12d   :  { %182 = vsyncpa [#allocation3], 1 }
 0x12e   :  { %183 = vsyncpa [#allocation6], 1 }
 0x12f   :  { %184 = vsyncpa [#allocation4], 1 }

</bundles_post_ra>
